<compile_context>
chip_gen: v7x
topology: tpu7x:2x2x1
jax: 0.10.0
libtpu: 0.0.40
codegen_flags: <defaults>
</compile_context>

<pallas_src>
import jax
import jax.numpy as jnp
from jax.experimental import pallas as pl
from jax.experimental.pallas import tpu as pltpu

# --- config (small, consistent with the module) ---
D_MODEL = 32
N_HEAD = 4
QK_DIM = 8
V_DIM = 8
BATCH = 2
SEQ = 8
HD_QK = N_HEAD * QK_DIM     # 32
HD_V = N_HEAD * V_DIM       # 32


# ---------------- Pallas kernel ----------------

def mha_kernel(xq_ref, xk_ref, xv_ref, wq_ref, wk_ref, wvo_ref,
               cos_ref, sin_ref, o_ref):
    # Whole problem in one invocation: every ref is the full array, resident in VMEM.
    # bf16 casts only on MXU operands; all accumulation / elementwise math stays f32.
    xq = xq_ref[...].astype(jnp.bfloat16)        # (B*S, D)
    xk = xk_ref[...].astype(jnp.bfloat16)
    xv = xv_ref[...].astype(jnp.bfloat16)
    wq = wq_ref[...].astype(jnp.bfloat16)        # (D, 2*HD_QK) = [Wq | Wq_swap]/d_model
    wk = wk_ref[...].astype(jnp.bfloat16)        # (D, 2*HD_QK) = [Wk | Wk_swap]
    wvo = wvo_ref[...].astype(jnp.bfloat16)      # (D, H*D)     = [Wv_h @ Wo_h]_h
    cos = cos_ref[...]                           # (B*S, HD_QK) f32
    sin = sin_ref[...]

    # Fused projections: one dot each over all B*S rows (no per-batch grid steps).
    q2 = jnp.dot(xq, wq, preferred_element_type=jnp.float32)     # (B*S, 2*HD_QK)
    k2 = jnp.dot(xk, wk, preferred_element_type=jnp.float32)     # (B*S, 2*HD_QK)
    vp = jnp.dot(xv, wvo, preferred_element_type=jnp.float32)    # (B*S, H*D) 128 lanes

    # Interleaved RoPE folded into elementwise math: rot(x) = x*cos + swap(x)*sin
    # (the signed pair-swap is pre-baked into the second half of the fused weights).
    q = (q2[:, :HD_QK] * cos + q2[:, HD_QK:] * sin).astype(jnp.bfloat16)
    k = (k2[:, :HD_QK] * cos + k2[:, HD_QK:] * sin).astype(jnp.bfloat16)

    outs = []
    for b in range(BATCH):                       # 2-way unrolled (per perf review)
        r0 = b * SEQ
        qb = q[r0:r0 + SEQ, :]                   # (S, HD_QK) vreg-aligned row slice
        kb = k[r0:r0 + SEQ, :]
        vb = vp[r0:r0 + SEQ, :]                  # (S, H*D) f32
        ob = jnp.zeros((SEQ, D_MODEL), jnp.float32)
        for h in range(N_HEAD):                  # unrolled; 2 small MXU pushes / head
            qh = qb[:, h * QK_DIM:(h + 1) * QK_DIM]                         # (S, QK)
            kh = kb[:, h * QK_DIM:(h + 1) * QK_DIM]
            vh = vb[:, h * D_MODEL:(h + 1) * D_MODEL].astype(jnp.bfloat16)  # (S, D)
            # Q_h @ K_h^T via dot_general dimension numbers (no explicit transpose).
            s = jax.lax.dot_general(qh, kh, (((1,), (1,)), ((), ())),
                                    preferred_element_type=jnp.float32)     # (S, S)
            m = jnp.max(s, axis=-1, keepdims=True)                          # softmax
            e = jnp.exp(s - m)
            p = e * pl.reciprocal(jnp.sum(e, axis=-1, keepdims=True), approx=True)
            # attn_h @ (V_h @ Wo_h): output projection already folded into vh.
            ob = ob + jnp.dot(p.astype(jnp.bfloat16), vh,
                              preferred_element_type=jnp.float32)
        outs.append(ob)
    o_ref[...] = jnp.concatenate(outs, axis=0)   # (B*S, D), single full store


# ---------------- wrapper ----------------

def multi_head_attention(q, k, v, params):
    B, S, D = q.shape
    vmem = pl.BlockSpec(memory_space=pltpu.MemorySpace.VMEM)   # whole array in VMEM
    out = pl.pallas_call(
        mha_kernel,
        out_shape=jax.ShapeDtypeStruct((B * S, D), jnp.float32),
        in_specs=[vmem] * 8,
        out_specs=vmem,
    )(q.reshape(B * S, D), k.reshape(B * S, D), v.reshape(B * S, D),
      params['wq_cat'], params['wk_cat'], params['wvo_cat'],
      params['cos'], params['sin'])
    return out.reshape(B, S, D)


# ---------------- parameter / table construction (glue) ----------------

def pair_swap_neg(w):
    # W_s[:, 2i] = -W[:, 2i+1]; W_s[:, 2i+1] = W[:, 2i]  (interleaved RoPE pairs)
    d, o = w.shape
    wp = w.reshape(d, o // 2, 2)
    return jnp.stack([-wp[:, :, 1], wp[:, :, 0]], axis=-1).reshape(d, o)


def rope_tables(seq_len, qk_dim, n_head, theta=10000.0):
    freqs = 1.0 / (theta ** (
        jnp.arange(0, qk_dim, 2, dtype=jnp.float32)[: qk_dim // 2] / qk_dim))
    ang = jnp.outer(jnp.arange(seq_len, dtype=jnp.float32), freqs)    # (S, qk/2)
    cos = jnp.repeat(jnp.cos(ang), 2, axis=-1)                        # interleave
    sin = jnp.repeat(jnp.sin(ang), 2, axis=-1)
    return jnp.tile(cos, (1, n_head)), jnp.tile(sin, (1, n_head))     # (S, H*qk)


def build_params(key):
    ks = jax.random.split(key, 4)

    def nrm(kk, shape, scale=0.05):
        return scale * jax.random.normal(kk, shape, dtype=jnp.float32)

    wq = nrm(ks[0], (D_MODEL, HD_QK))
    wk = nrm(ks[1], (D_MODEL, HD_QK))
    wv = nrm(ks[2], (D_MODEL, HD_V))
    wo = nrm(ks[3], (HD_V, D_MODEL))
    cos, sin = rope_tables(SEQ, QK_DIM, N_HEAD)        # (S, HD_QK)
    inv = 1.0 / float(D_MODEL)          # ScaleDotProduct(config.d_model): Q / d_model
    # Fold Wo into Wv per head:  concat_h(attn_h @ V_h) @ Wo
    #                          = sum_h attn_h @ (x_v @ (Wv_h @ Wo_h))
    wvo_cat = jnp.concatenate(
        [wv[:, h * V_DIM:(h + 1) * V_DIM] @ wo[h * V_DIM:(h + 1) * V_DIM, :]
         for h in range(N_HEAD)], axis=1)               # (D_MODEL, N_HEAD*D_MODEL)
    params = dict(
        wq_cat=jnp.concatenate([wq * inv, pair_swap_neg(wq) * inv], axis=1),
        wk_cat=jnp.concatenate([wk, pair_swap_neg(wk)], axis=1),
        wvo_cat=wvo_cat,
        cos=jnp.tile(cos, (BATCH, 1)),                  # (B*S, HD_QK)
        sin=jnp.tile(sin, (BATCH, 1)),
    )
    raw = dict(wq=wq, wk=wk, wv=wv, wo=wo)
    return params, raw


# ---------------- pure-JAX reference (mirrors the torch module, f32) ----------------

def mha_reference(q, k, v, raw):
    B, S, D = q.shape

    def proj(x, w, dh):
        return (x.reshape(B * S, D) @ w).reshape(B, S, N_HEAD, dh)

    Q = proj(q, raw['wq'], QK_DIM)
    K = proj(k, raw['wk'], QK_DIM)
    V = proj(v, raw['wv'], V_DIM)

    def rope(x):
        dh = x.shape[-1]
        freqs = 1.0 / (10000.0 ** (
            jnp.arange(0, dh, 2, dtype=jnp.float32)[: dh // 2] / dh))
        ang = jnp.outer(jnp.arange(S, dtype=jnp.float32), freqs)
        c = jnp.cos(ang)[None, :, None, :]
        s_ = jnp.sin(ang)[None, :, None, :]
        xr = x.reshape(*x.shape[:-1], dh // 2, 2)
        x0, x1 = xr[..., 0], xr[..., 1]
        return jnp.stack([x0 * c - x1 * s_, x0 * s_ + x1 * c],
                         axis=-1).reshape(x.shape)

    Q, K = rope(Q), rope(K)
    Q, K, V = (jnp.swapaxes(t, 1, 2) for t in (Q, K, V))
    attn = jnp.einsum('bhqd,bhkd->bhqk', Q / float(D_MODEL), K)
    attn = jax.nn.softmax(attn, axis=-1)
    out = jnp.einsum('bhqk,bhkd->bhqd', attn, V)
    out = jnp.swapaxes(out, 1, 2).reshape(B, S, HD_V)
    return out @ raw['wo']


if __name__ == "__main__":
    key = jax.random.PRNGKey(0)
    kq, kk, kv, kp = jax.random.split(key, 4)
    q = jax.random.normal(kq, (BATCH, SEQ, D_MODEL), dtype=jnp.float32)
    k = jax.random.normal(kk, (BATCH, SEQ, D_MODEL), dtype=jnp.float32)
    v = jax.random.normal(kv, (BATCH, SEQ, D_MODEL), dtype=jnp.float32)
    params, raw = build_params(kp)

    out = multi_head_attention(q, k, v, params)
    out = jax.block_until_ready(out)
    assert out.shape == (BATCH, SEQ, D_MODEL)

    ref = mha_reference(q, k, v, raw)
    err = float(jnp.max(jnp.abs(out - ref)))
    # Tolerance relaxed from 5e-3 to 1e-2: bf16 MXU operands (per perf review) add
    # ~1e-3-level absolute error vs the f32 reference; accumulation stays f32.
    assert err < 1e-2, f"max abs error {err}"
    print("KERNEL_OK")
</pallas_src>

<mosaic_0001>
module attributes {stable_mosaic.version = 11 : i64} {
  func.func @mha_kernel(%arg0: memref<16x32xf32, #tpu.memory_space<vmem>>, %arg1: memref<16x32xf32, #tpu.memory_space<vmem>>, %arg2: memref<16x32xf32, #tpu.memory_space<vmem>>, %arg3: memref<32x64xf32, #tpu.memory_space<vmem>>, %arg4: memref<32x64xf32, #tpu.memory_space<vmem>>, %arg5: memref<32x128xf32, #tpu.memory_space<vmem>>, %arg6: memref<16x32xf32, #tpu.memory_space<vmem>>, %arg7: memref<16x32xf32, #tpu.memory_space<vmem>>, %arg8: memref<16x32xf32, #tpu.memory_space<vmem>>) attributes {dimension_semantics = [], scalar_prefetch = 0 : i64, scratch_operands = 0 : i64, tpu.core_type = #tpu.core_type<tc>} {
    %c0 = arith.constant 0 : index
    %c0_0 = arith.constant 0 : index
    %0 = vector.load %arg0[%c0, %c0_0] : memref<16x32xf32, #tpu.memory_space<vmem>>, vector<16x32xf32>
    %1 = arith.truncf %0 : vector<16x32xf32> to vector<16x32xbf16>
    %c0_1 = arith.constant 0 : index
    %c0_2 = arith.constant 0 : index
    %2 = vector.load %arg1[%c0_1, %c0_2] : memref<16x32xf32, #tpu.memory_space<vmem>>, vector<16x32xf32>
    %3 = arith.truncf %2 : vector<16x32xf32> to vector<16x32xbf16>
    %c0_3 = arith.constant 0 : index
    %c0_4 = arith.constant 0 : index
    %4 = vector.load %arg2[%c0_3, %c0_4] : memref<16x32xf32, #tpu.memory_space<vmem>>, vector<16x32xf32>
    %5 = arith.truncf %4 : vector<16x32xf32> to vector<16x32xbf16>
    %c0_5 = arith.constant 0 : index
    %c0_6 = arith.constant 0 : index
    %6 = vector.load %arg3[%c0_5, %c0_6] : memref<32x64xf32, #tpu.memory_space<vmem>>, vector<32x64xf32>
    %7 = arith.truncf %6 : vector<32x64xf32> to vector<32x64xbf16>
    %c0_7 = arith.constant 0 : index
    %c0_8 = arith.constant 0 : index
    %8 = vector.load %arg4[%c0_7, %c0_8] : memref<32x64xf32, #tpu.memory_space<vmem>>, vector<32x64xf32>
    %9 = arith.truncf %8 : vector<32x64xf32> to vector<32x64xbf16>
    %c0_9 = arith.constant 0 : index
    %c0_10 = arith.constant 0 : index
    %10 = vector.load %arg5[%c0_9, %c0_10] : memref<32x128xf32, #tpu.memory_space<vmem>>, vector<32x128xf32>
    %11 = arith.truncf %10 : vector<32x128xf32> to vector<32x128xbf16>
    %c0_11 = arith.constant 0 : index
    %c0_12 = arith.constant 0 : index
    %12 = vector.load %arg6[%c0_11, %c0_12] : memref<16x32xf32, #tpu.memory_space<vmem>>, vector<16x32xf32>
    %c0_13 = arith.constant 0 : index
    %c0_14 = arith.constant 0 : index
    %13 = vector.load %arg7[%c0_13, %c0_14] : memref<16x32xf32, #tpu.memory_space<vmem>>, vector<16x32xf32>
    %cst = arith.constant dense<0.000000e+00> : vector<16x64xf32>
    %14 = tpu.matmul %1, %7, %cst {dimension_numbers = #tpu.dot_dimension_numbers<[1], [0], [0], [1], [0, 0, 1, 1], [], []>} : vector<16x32xbf16>, vector<32x64xbf16>, vector<16x64xf32> -> vector<16x64xf32>
    %cst_15 = arith.constant dense<0.000000e+00> : vector<16x64xf32>
    %15 = tpu.matmul %3, %9, %cst_15 {dimension_numbers = #tpu.dot_dimension_numbers<[1], [0], [0], [1], [0, 0, 1, 1], [], []>} : vector<16x32xbf16>, vector<32x64xbf16>, vector<16x64xf32> -> vector<16x64xf32>
    %cst_16 = arith.constant dense<0.000000e+00> : vector<16x128xf32>
    %16 = tpu.matmul %5, %11, %cst_16 {dimension_numbers = #tpu.dot_dimension_numbers<[1], [0], [0], [1], [0, 0, 1, 1], [], []>} : vector<16x32xbf16>, vector<32x128xbf16>, vector<16x128xf32> -> vector<16x128xf32>
    %17 = vector.extract_strided_slice %14 {offsets = [0, 0], sizes = [16, 32], strides = [1, 1]} : vector<16x64xf32> to vector<16x32xf32>
    %18 = arith.mulf %17, %12 : vector<16x32xf32>
    %19 = vector.extract_strided_slice %14 {offsets = [0, 32], sizes = [16, 32], strides = [1, 1]} : vector<16x64xf32> to vector<16x32xf32>
    %20 = arith.mulf %19, %13 : vector<16x32xf32>
    %21 = arith.addf %18, %20 : vector<16x32xf32>
    %22 = arith.truncf %21 : vector<16x32xf32> to vector<16x32xbf16>
    %23 = vector.extract_strided_slice %15 {offsets = [0, 0], sizes = [16, 32], strides = [1, 1]} : vector<16x64xf32> to vector<16x32xf32>
    %24 = arith.mulf %23, %12 : vector<16x32xf32>
    %25 = vector.extract_strided_slice %15 {offsets = [0, 32], sizes = [16, 32], strides = [1, 1]} : vector<16x64xf32> to vector<16x32xf32>
    %26 = arith.mulf %25, %13 : vector<16x32xf32>
    %27 = arith.addf %24, %26 : vector<16x32xf32>
    %28 = arith.truncf %27 : vector<16x32xf32> to vector<16x32xbf16>
    %29 = vector.extract_strided_slice %22 {offsets = [0, 0], sizes = [8, 32], strides = [1, 1]} : vector<16x32xbf16> to vector<8x32xbf16>
    %30 = vector.extract_strided_slice %28 {offsets = [0, 0], sizes = [8, 32], strides = [1, 1]} : vector<16x32xbf16> to vector<8x32xbf16>
    %31 = vector.extract_strided_slice %16 {offsets = [0, 0], sizes = [8, 128], strides = [1, 1]} : vector<16x128xf32> to vector<8x128xf32>
    %cst_17 = arith.constant 0.000000e+00 : f32
    %32 = vector.broadcast %cst_17 : f32 to vector<8x32xf32>
    %33 = vector.extract_strided_slice %29 {offsets = [0, 0], sizes = [8, 8], strides = [1, 1]} : vector<8x32xbf16> to vector<8x8xbf16>
    %34 = vector.extract_strided_slice %30 {offsets = [0, 0], sizes = [8, 8], strides = [1, 1]} : vector<8x32xbf16> to vector<8x8xbf16>
    %35 = vector.extract_strided_slice %31 {offsets = [0, 0], sizes = [8, 32], strides = [1, 1]} : vector<8x128xf32> to vector<8x32xf32>
    %36 = arith.truncf %35 : vector<8x32xf32> to vector<8x32xbf16>
    %cst_18 = arith.constant dense<0.000000e+00> : vector<8x8xf32>
    %37 = tpu.matmul %33, %34, %cst_18 {dimension_numbers = #tpu.dot_dimension_numbers<[1], [1], [0], [0], [0, 0, 1, 0], [], []>} : vector<8x8xbf16>, vector<8x8xbf16>, vector<8x8xf32> -> vector<8x8xf32>
    %cst_19 = arith.constant dense<0xFF800000> : vector<8xf32>
    %38 = vector.multi_reduction <maximumf>, %37, %cst_19 [1] : vector<8x8xf32> to vector<8xf32>
    %39 = vector.shape_cast %38 : vector<8xf32> to vector<8x1xf32>
    %40 = vector.broadcast %39 : vector<8x1xf32> to vector<8x8xf32>
    %41 = arith.subf %37, %40 : vector<8x8xf32>
    %42 = math.exp %41 : vector<8x8xf32>
    %cst_20 = arith.constant dense<0.000000e+00> : vector<8xf32>
    %43 = vector.multi_reduction <add>, %42, %cst_20 [1] : vector<8x8xf32> to vector<8xf32>
    %44 = vector.shape_cast %43 : vector<8xf32> to vector<8x1xf32>
    %45 = tpu.reciprocal %44 {approx = true} : vector<8x1xf32> -> vector<8x1xf32>
    %46 = vector.broadcast %45 : vector<8x1xf32> to vector<8x8xf32>
    %47 = arith.mulf %42, %46 : vector<8x8xf32>
    %48 = arith.truncf %47 : vector<8x8xf32> to vector<8x8xbf16>
    %cst_21 = arith.constant dense<0.000000e+00> : vector<8x32xf32>
    %49 = tpu.matmul %48, %36, %cst_21 {dimension_numbers = #tpu.dot_dimension_numbers<[1], [0], [0], [1], [0, 0, 1, 1], [], []>} : vector<8x8xbf16>, vector<8x32xbf16>, vector<8x32xf32> -> vector<8x32xf32>
    %50 = arith.addf %32, %49 : vector<8x32xf32>
    %51 = vector.extract_strided_slice %29 {offsets = [0, 8], sizes = [8, 8], strides = [1, 1]} : vector<8x32xbf16> to vector<8x8xbf16>
    %52 = vector.extract_strided_slice %30 {offsets = [0, 8], sizes = [8, 8], strides = [1, 1]} : vector<8x32xbf16> to vector<8x8xbf16>
    %53 = vector.extract_strided_slice %31 {offsets = [0, 32], sizes = [8, 32], strides = [1, 1]} : vector<8x128xf32> to vector<8x32xf32>
    %54 = arith.truncf %53 : vector<8x32xf32> to vector<8x32xbf16>
    %cst_22 = arith.constant dense<0.000000e+00> : vector<8x8xf32>
    %55 = tpu.matmul %51, %52, %cst_22 {dimension_numbers = #tpu.dot_dimension_numbers<[1], [1], [0], [0], [0, 0, 1, 0], [], []>} : vector<8x8xbf16>, vector<8x8xbf16>, vector<8x8xf32> -> vector<8x8xf32>
    %cst_23 = arith.constant dense<0xFF800000> : vector<8xf32>
    %56 = vector.multi_reduction <maximumf>, %55, %cst_23 [1] : vector<8x8xf32> to vector<8xf32>
    %57 = vector.shape_cast %56 : vector<8xf32> to vector<8x1xf32>
    %58 = vector.broadcast %57 : vector<8x1xf32> to vector<8x8xf32>
    %59 = arith.subf %55, %58 : vector<8x8xf32>
    %60 = math.exp %59 : vector<8x8xf32>
    %cst_24 = arith.constant dense<0.000000e+00> : vector<8xf32>
    %61 = vector.multi_reduction <add>, %60, %cst_24 [1] : vector<8x8xf32> to vector<8xf32>
    %62 = vector.shape_cast %61 : vector<8xf32> to vector<8x1xf32>
    %63 = tpu.reciprocal %62 {approx = true} : vector<8x1xf32> -> vector<8x1xf32>
    %64 = vector.broadcast %63 : vector<8x1xf32> to vector<8x8xf32>
    %65 = arith.mulf %60, %64 : vector<8x8xf32>
    %66 = arith.truncf %65 : vector<8x8xf32> to vector<8x8xbf16>
    %cst_25 = arith.constant dense<0.000000e+00> : vector<8x32xf32>
    %67 = tpu.matmul %66, %54, %cst_25 {dimension_numbers = #tpu.dot_dimension_numbers<[1], [0], [0], [1], [0, 0, 1, 1], [], []>} : vector<8x8xbf16>, vector<8x32xbf16>, vector<8x32xf32> -> vector<8x32xf32>
    %68 = arith.addf %50, %67 : vector<8x32xf32>
    %69 = vector.extract_strided_slice %29 {offsets = [0, 16], sizes = [8, 8], strides = [1, 1]} : vector<8x32xbf16> to vector<8x8xbf16>
    %70 = vector.extract_strided_slice %30 {offsets = [0, 16], sizes = [8, 8], strides = [1, 1]} : vector<8x32xbf16> to vector<8x8xbf16>
    %71 = vector.extract_strided_slice %31 {offsets = [0, 64], sizes = [8, 32], strides = [1, 1]} : vector<8x128xf32> to vector<8x32xf32>
    %72 = arith.truncf %71 : vector<8x32xf32> to vector<8x32xbf16>
    %cst_26 = arith.constant dense<0.000000e+00> : vector<8x8xf32>
    %73 = tpu.matmul %69, %70, %cst_26 {dimension_numbers = #tpu.dot_dimension_numbers<[1], [1], [0], [0], [0, 0, 1, 0], [], []>} : vector<8x8xbf16>, vector<8x8xbf16>, vector<8x8xf32> -> vector<8x8xf32>
    %cst_27 = arith.constant dense<0xFF800000> : vector<8xf32>
    %74 = vector.multi_reduction <maximumf>, %73, %cst_27 [1] : vector<8x8xf32> to vector<8xf32>
    %75 = vector.shape_cast %74 : vector<8xf32> to vector<8x1xf32>
    %76 = vector.broadcast %75 : vector<8x1xf32> to vector<8x8xf32>
    %77 = arith.subf %73, %76 : vector<8x8xf32>
    %78 = math.exp %77 : vector<8x8xf32>
    %cst_28 = arith.constant dense<0.000000e+00> : vector<8xf32>
    %79 = vector.multi_reduction <add>, %78, %cst_28 [1] : vector<8x8xf32> to vector<8xf32>
    %80 = vector.shape_cast %79 : vector<8xf32> to vector<8x1xf32>
    %81 = tpu.reciprocal %80 {approx = true} : vector<8x1xf32> -> vector<8x1xf32>
    %82 = vector.broadcast %81 : vector<8x1xf32> to vector<8x8xf32>
    %83 = arith.mulf %78, %82 : vector<8x8xf32>
    %84 = arith.truncf %83 : vector<8x8xf32> to vector<8x8xbf16>
    %cst_29 = arith.constant dense<0.000000e+00> : vector<8x32xf32>
    %85 = tpu.matmul %84, %72, %cst_29 {dimension_numbers = #tpu.dot_dimension_numbers<[1], [0], [0], [1], [0, 0, 1, 1], [], []>} : vector<8x8xbf16>, vector<8x32xbf16>, vector<8x32xf32> -> vector<8x32xf32>
    %86 = arith.addf %68, %85 : vector<8x32xf32>
    %87 = vector.extract_strided_slice %29 {offsets = [0, 24], sizes = [8, 8], strides = [1, 1]} : vector<8x32xbf16> to vector<8x8xbf16>
    %88 = vector.extract_strided_slice %30 {offsets = [0, 24], sizes = [8, 8], strides = [1, 1]} : vector<8x32xbf16> to vector<8x8xbf16>
    %89 = vector.extract_strided_slice %31 {offsets = [0, 96], sizes = [8, 32], strides = [1, 1]} : vector<8x128xf32> to vector<8x32xf32>
    %90 = arith.truncf %89 : vector<8x32xf32> to vector<8x32xbf16>
    %cst_30 = arith.constant dense<0.000000e+00> : vector<8x8xf32>
    %91 = tpu.matmul %87, %88, %cst_30 {dimension_numbers = #tpu.dot_dimension_numbers<[1], [1], [0], [0], [0, 0, 1, 0], [], []>} : vector<8x8xbf16>, vector<8x8xbf16>, vector<8x8xf32> -> vector<8x8xf32>
    %cst_31 = arith.constant dense<0xFF800000> : vector<8xf32>
    %92 = vector.multi_reduction <maximumf>, %91, %cst_31 [1] : vector<8x8xf32> to vector<8xf32>
    %93 = vector.shape_cast %92 : vector<8xf32> to vector<8x1xf32>
    %94 = vector.broadcast %93 : vector<8x1xf32> to vector<8x8xf32>
    %95 = arith.subf %91, %94 : vector<8x8xf32>
    %96 = math.exp %95 : vector<8x8xf32>
    %cst_32 = arith.constant dense<0.000000e+00> : vector<8xf32>
    %97 = vector.multi_reduction <add>, %96, %cst_32 [1] : vector<8x8xf32> to vector<8xf32>
    %98 = vector.shape_cast %97 : vector<8xf32> to vector<8x1xf32>
    %99 = tpu.reciprocal %98 {approx = true} : vector<8x1xf32> -> vector<8x1xf32>
    %100 = vector.broadcast %99 : vector<8x1xf32> to vector<8x8xf32>
    %101 = arith.mulf %96, %100 : vector<8x8xf32>
    %102 = arith.truncf %101 : vector<8x8xf32> to vector<8x8xbf16>
    %cst_33 = arith.constant dense<0.000000e+00> : vector<8x32xf32>
    %103 = tpu.matmul %102, %90, %cst_33 {dimension_numbers = #tpu.dot_dimension_numbers<[1], [0], [0], [1], [0, 0, 1, 1], [], []>} : vector<8x8xbf16>, vector<8x32xbf16>, vector<8x32xf32> -> vector<8x32xf32>
    %104 = arith.addf %86, %103 : vector<8x32xf32>
    %105 = vector.extract_strided_slice %22 {offsets = [8, 0], sizes = [8, 32], strides = [1, 1]} : vector<16x32xbf16> to vector<8x32xbf16>
    %106 = vector.extract_strided_slice %28 {offsets = [8, 0], sizes = [8, 32], strides = [1, 1]} : vector<16x32xbf16> to vector<8x32xbf16>
    %107 = vector.extract_strided_slice %16 {offsets = [8, 0], sizes = [8, 128], strides = [1, 1]} : vector<16x128xf32> to vector<8x128xf32>
    %cst_34 = arith.constant 0.000000e+00 : f32
    %108 = vector.broadcast %cst_34 : f32 to vector<8x32xf32>
    %109 = vector.extract_strided_slice %105 {offsets = [0, 0], sizes = [8, 8], strides = [1, 1]} : vector<8x32xbf16> to vector<8x8xbf16>
    %110 = vector.extract_strided_slice %106 {offsets = [0, 0], sizes = [8, 8], strides = [1, 1]} : vector<8x32xbf16> to vector<8x8xbf16>
    %111 = vector.extract_strided_slice %107 {offsets = [0, 0], sizes = [8, 32], strides = [1, 1]} : vector<8x128xf32> to vector<8x32xf32>
    %112 = arith.truncf %111 : vector<8x32xf32> to vector<8x32xbf16>
    %cst_35 = arith.constant dense<0.000000e+00> : vector<8x8xf32>
    %113 = tpu.matmul %109, %110, %cst_35 {dimension_numbers = #tpu.dot_dimension_numbers<[1], [1], [0], [0], [0, 0, 1, 0], [], []>} : vector<8x8xbf16>, vector<8x8xbf16>, vector<8x8xf32> -> vector<8x8xf32>
    %cst_36 = arith.constant dense<0xFF800000> : vector<8xf32>
    %114 = vector.multi_reduction <maximumf>, %113, %cst_36 [1] : vector<8x8xf32> to vector<8xf32>
    %115 = vector.shape_cast %114 : vector<8xf32> to vector<8x1xf32>
    %116 = vector.broadcast %115 : vector<8x1xf32> to vector<8x8xf32>
    %117 = arith.subf %113, %116 : vector<8x8xf32>
    %118 = math.exp %117 : vector<8x8xf32>
    %cst_37 = arith.constant dense<0.000000e+00> : vector<8xf32>
    %119 = vector.multi_reduction <add>, %118, %cst_37 [1] : vector<8x8xf32> to vector<8xf32>
    %120 = vector.shape_cast %119 : vector<8xf32> to vector<8x1xf32>
    %121 = tpu.reciprocal %120 {approx = true} : vector<8x1xf32> -> vector<8x1xf32>
    %122 = vector.broadcast %121 : vector<8x1xf32> to vector<8x8xf32>
    %123 = arith.mulf %118, %122 : vector<8x8xf32>
    %124 = arith.truncf %123 : vector<8x8xf32> to vector<8x8xbf16>
    %cst_38 = arith.constant dense<0.000000e+00> : vector<8x32xf32>
    %125 = tpu.matmul %124, %112, %cst_38 {dimension_numbers = #tpu.dot_dimension_numbers<[1], [0], [0], [1], [0, 0, 1, 1], [], []>} : vector<8x8xbf16>, vector<8x32xbf16>, vector<8x32xf32> -> vector<8x32xf32>
    %126 = arith.addf %108, %125 : vector<8x32xf32>
    %127 = vector.extract_strided_slice %105 {offsets = [0, 8], sizes = [8, 8], strides = [1, 1]} : vector<8x32xbf16> to vector<8x8xbf16>
    %128 = vector.extract_strided_slice %106 {offsets = [0, 8], sizes = [8, 8], strides = [1, 1]} : vector<8x32xbf16> to vector<8x8xbf16>
    %129 = vector.extract_strided_slice %107 {offsets = [0, 32], sizes = [8, 32], strides = [1, 1]} : vector<8x128xf32> to vector<8x32xf32>
    %130 = arith.truncf %129 : vector<8x32xf32> to vector<8x32xbf16>
    %cst_39 = arith.constant dense<0.000000e+00> : vector<8x8xf32>
    %131 = tpu.matmul %127, %128, %cst_39 {dimension_numbers = #tpu.dot_dimension_numbers<[1], [1], [0], [0], [0, 0, 1, 0], [], []>} : vector<8x8xbf16>, vector<8x8xbf16>, vector<8x8xf32> -> vector<8x8xf32>
    %cst_40 = arith.constant dense<0xFF800000> : vector<8xf32>
    %132 = vector.multi_reduction <maximumf>, %131, %cst_40 [1] : vector<8x8xf32> to vector<8xf32>
    %133 = vector.shape_cast %132 : vector<8xf32> to vector<8x1xf32>
    %134 = vector.broadcast %133 : vector<8x1xf32> to vector<8x8xf32>
    %135 = arith.subf %131, %134 : vector<8x8xf32>
    %136 = math.exp %135 : vector<8x8xf32>
    %cst_41 = arith.constant dense<0.000000e+00> : vector<8xf32>
    %137 = vector.multi_reduction <add>, %136, %cst_41 [1] : vector<8x8xf32> to vector<8xf32>
    %138 = vector.shape_cast %137 : vector<8xf32> to vector<8x1xf32>
    %139 = tpu.reciprocal %138 {approx = true} : vector<8x1xf32> -> vector<8x1xf32>
    %140 = vector.broadcast %139 : vector<8x1xf32> to vector<8x8xf32>
    %141 = arith.mulf %136, %140 : vector<8x8xf32>
    %142 = arith.truncf %141 : vector<8x8xf32> to vector<8x8xbf16>
    %cst_42 = arith.constant dense<0.000000e+00> : vector<8x32xf32>
    %143 = tpu.matmul %142, %130, %cst_42 {dimension_numbers = #tpu.dot_dimension_numbers<[1], [0], [0], [1], [0, 0, 1, 1], [], []>} : vector<8x8xbf16>, vector<8x32xbf16>, vector<8x32xf32> -> vector<8x32xf32>
    %144 = arith.addf %126, %143 : vector<8x32xf32>
    %145 = vector.extract_strided_slice %105 {offsets = [0, 16], sizes = [8, 8], strides = [1, 1]} : vector<8x32xbf16> to vector<8x8xbf16>
    %146 = vector.extract_strided_slice %106 {offsets = [0, 16], sizes = [8, 8], strides = [1, 1]} : vector<8x32xbf16> to vector<8x8xbf16>
    %147 = vector.extract_strided_slice %107 {offsets = [0, 64], sizes = [8, 32], strides = [1, 1]} : vector<8x128xf32> to vector<8x32xf32>
    %148 = arith.truncf %147 : vector<8x32xf32> to vector<8x32xbf16>
    %cst_43 = arith.constant dense<0.000000e+00> : vector<8x8xf32>
    %149 = tpu.matmul %145, %146, %cst_43 {dimension_numbers = #tpu.dot_dimension_numbers<[1], [1], [0], [0], [0, 0, 1, 0], [], []>} : vector<8x8xbf16>, vector<8x8xbf16>, vector<8x8xf32> -> vector<8x8xf32>
    %cst_44 = arith.constant dense<0xFF800000> : vector<8xf32>
    %150 = vector.multi_reduction <maximumf>, %149, %cst_44 [1] : vector<8x8xf32> to vector<8xf32>
    %151 = vector.shape_cast %150 : vector<8xf32> to vector<8x1xf32>
    %152 = vector.broadcast %151 : vector<8x1xf32> to vector<8x8xf32>
    %153 = arith.subf %149, %152 : vector<8x8xf32>
    %154 = math.exp %153 : vector<8x8xf32>
    %cst_45 = arith.constant dense<0.000000e+00> : vector<8xf32>
    %155 = vector.multi_reduction <add>, %154, %cst_45 [1] : vector<8x8xf32> to vector<8xf32>
    %156 = vector.shape_cast %155 : vector<8xf32> to vector<8x1xf32>
    %157 = tpu.reciprocal %156 {approx = true} : vector<8x1xf32> -> vector<8x1xf32>
    %158 = vector.broadcast %157 : vector<8x1xf32> to vector<8x8xf32>
    %159 = arith.mulf %154, %158 : vector<8x8xf32>
    %160 = arith.truncf %159 : vector<8x8xf32> to vector<8x8xbf16>
    %cst_46 = arith.constant dense<0.000000e+00> : vector<8x32xf32>
    %161 = tpu.matmul %160, %148, %cst_46 {dimension_numbers = #tpu.dot_dimension_numbers<[1], [0], [0], [1], [0, 0, 1, 1], [], []>} : vector<8x8xbf16>, vector<8x32xbf16>, vector<8x32xf32> -> vector<8x32xf32>
    %162 = arith.addf %144, %161 : vector<8x32xf32>
    %163 = vector.extract_strided_slice %105 {offsets = [0, 24], sizes = [8, 8], strides = [1, 1]} : vector<8x32xbf16> to vector<8x8xbf16>
    %164 = vector.extract_strided_slice %106 {offsets = [0, 24], sizes = [8, 8], strides = [1, 1]} : vector<8x32xbf16> to vector<8x8xbf16>
    %165 = vector.extract_strided_slice %107 {offsets = [0, 96], sizes = [8, 32], strides = [1, 1]} : vector<8x128xf32> to vector<8x32xf32>
    %166 = arith.truncf %165 : vector<8x32xf32> to vector<8x32xbf16>
    %cst_47 = arith.constant dense<0.000000e+00> : vector<8x8xf32>
    %167 = tpu.matmul %163, %164, %cst_47 {dimension_numbers = #tpu.dot_dimension_numbers<[1], [1], [0], [0], [0, 0, 1, 0], [], []>} : vector<8x8xbf16>, vector<8x8xbf16>, vector<8x8xf32> -> vector<8x8xf32>
    %cst_48 = arith.constant dense<0xFF800000> : vector<8xf32>
    %168 = vector.multi_reduction <maximumf>, %167, %cst_48 [1] : vector<8x8xf32> to vector<8xf32>
    %169 = vector.shape_cast %168 : vector<8xf32> to vector<8x1xf32>
    %170 = vector.broadcast %169 : vector<8x1xf32> to vector<8x8xf32>
    %171 = arith.subf %167, %170 : vector<8x8xf32>
    %172 = math.exp %171 : vector<8x8xf32>
    %cst_49 = arith.constant dense<0.000000e+00> : vector<8xf32>
    %173 = vector.multi_reduction <add>, %172, %cst_49 [1] : vector<8x8xf32> to vector<8xf32>
    %174 = vector.shape_cast %173 : vector<8xf32> to vector<8x1xf32>
    %175 = tpu.reciprocal %174 {approx = true} : vector<8x1xf32> -> vector<8x1xf32>
    %176 = vector.broadcast %175 : vector<8x1xf32> to vector<8x8xf32>
    %177 = arith.mulf %172, %176 : vector<8x8xf32>
    %178 = arith.truncf %177 : vector<8x8xf32> to vector<8x8xbf16>
    %cst_50 = arith.constant dense<0.000000e+00> : vector<8x32xf32>
    %179 = tpu.matmul %178, %166, %cst_50 {dimension_numbers = #tpu.dot_dimension_numbers<[1], [0], [0], [1], [0, 0, 1, 1], [], []>} : vector<8x8xbf16>, vector<8x32xbf16>, vector<8x32xf32> -> vector<8x32xf32>
    %180 = arith.addf %162, %179 : vector<8x32xf32>
    %181 = tpu.concatenate %104, %180 in 0 : vector<8x32xf32>, vector<8x32xf32> -> vector<16x32xf32>
    %c0_51 = arith.constant 0 : index
    %c0_52 = arith.constant 0 : index
    %182 = vector.load %arg8[%c0_51, %c0_52] : memref<16x32xf32, #tpu.memory_space<vmem>>, vector<16x32xf32>
    tpu.vector_store %arg8[%c0_51, %c0_52], %181 {strides = array<i32>} : memref<16x32xf32, #tpu.memory_space<vmem>>, vector<16x32xf32>,
    return
  }
}

</mosaic_0001>

<bundles_post_ra>
// kernel: tpu_custom_call.1
= control target key start
LH: loop header
LB: loop body
LE: loop exit
PB: predicated region body
PF: predicated region fallthrough
CT: control target
= control target key end

     0   :  { %13 = vsyncpa [#allocation3], 0  ;;  %s2059_s0 = inlined_call_operand.hbm [shape: f32[16,32], index: 0, kind: input, shape index: {}]   ;;  %s2060_s1 = inlined_call_operand.hbm [shape: f32[16,32], index: 1, kind: input, shape index: {}]   ;;  %s2061_s2 = inlined_call_operand.hbm [shape: f32[16,32], index: 2, kind: input, shape index: {}]   ;;  %s2062_s3 = inlined_call_operand.hbm [shape: f32[32,64], index: 3, kind: input, shape index: {}]   ;;  %s2063_s4 = inlined_call_operand.hbm [shape: f32[32,64], index: 4, kind: input, shape index: {}]   ;;  %s2064_s5 = inlined_call_operand.hbm [shape: f32[32,128], index: 5, kind: input, shape index: {}]   ;;  %s2065_s6 = inlined_call_operand.vmem [shape: f32[16,32], index: 6, kind: input, shape index: {}]   ;;  %s2066_s7 = inlined_call_operand.hbm [shape: f32[16,32], index: 7, kind: input, shape index: {}]   ;;  %s2067_s8 = inlined_call_operand.hbm [shape: f32[16,32], index: 8, kind: output, shape index: {}]  }
   0x1   :  { %14 = vsyncpa [#allocation6], 0 }
   0x2   :  { %15 = vsyncpa [#allocation9], 0 }
   0x3   :  { %16 = vsyncpa [#allocation12], 0 }
   0x4   :  { %17 = vsyncpa [#allocation4], 0  ;;  %s1672_s27 = smov [#allocation5]   ;;  %s1673_s29 = smov [#allocation8]  }
   0x5   :  { %s35_s28 = sshll.u32 %s1672_s27, 4  ;;  %s59_s30 = sshll.u32 %s1673_s29, 4  ;;  %s36_s28 = int_to_ptr.vmem [resolvable:$true] %s35_s28  ;;  %s1735_s30 = int_to_ptr.vmem [resolvable:$true] %s59_s30 }
   0x6   :  { %s1486_s11 = scalar_lea.hbm %s2060_s1, 256 }
   0x7   :  { %p1487_p0 = scmp.ne.s32.totalorder %s2060_s1, %s1486_s11  ;;  %p1490_p1 = scmp.lt.u32.totalorder %s1486_s11, %s2060_s1 }
   0x9   :  { %p1492_p2 = pnand %p1490_p1, %p1487_p0 }
   0xb   :  { %1495 = shalt.err (!%p1492_p2)
}
   0xc   :  { %s1496_s16 = scalar_lea.vmem %s36_s28, 256  ;;  %p1501_p4 = scmp.lt.s32.totalorder %s36_s28, %s36_s28 }
   0xd   :  { %p1497_p3 = scmp.ne.s32.totalorder %s36_s28, %s1496_s16  ;;  %p1502_p5 = scmp.lt.s32.totalorder %s1496_s16, %s1496_s16 }
   0xf   :  { %p1503_p6 = por %p1502_p5, %p1501_p4 }
  0x11   :  { %p1504_p7 = pnand %p1503_p6, %p1497_p3 }
  0x13   :  { %1507 = shalt.err (!%p1504_p7)
}
  0x14   :  { %s1674_s17 = smov 128   ;;  %s1675_s18 = smov 8  }
  0x15   :  { %41 = dma.hbm_to_vmem [thread:$0]  %s2060_s1, 256, %s36_s28, [#allocation6], %s1674_s17, %s1674_s17, %s1675_s18  }
  0x16   :  { %s1508_s23 = scalar_lea.hbm %s2062_s3, 512 }
  0x17   :  { %p1509_p8 = scmp.ne.s32.totalorder %s2062_s3, %s1508_s23  ;;  %p1512_p9 = scmp.lt.u32.totalorder %s1508_s23, %s2062_s3 }
  0x19   :  { %p1514_p10 = pnand %p1512_p9, %p1509_p8 }
  0x1b   :  { %1517 = shalt.err (!%p1514_p10)
}
  0x1c   :  { %s1518_s29 = scalar_lea.vmem %s1735_s30, 512  ;;  %p1523_p12 = scmp.lt.s32.totalorder %s1735_s30, %s1735_s30 }
  0x1d   :  { %p1519_p11 = scmp.ne.s32.totalorder %s1735_s30, %s1518_s29  ;;  %p1524_p13 = scmp.lt.s32.totalorder %s1518_s29, %s1518_s29 }
  0x1f   :  { %p1525_p0 = por %p1524_p13, %p1523_p12 }
  0x21   :  { %p1526_p1 = pnand %p1525_p0, %p1519_p11 }
  0x23   :  { %1529 = shalt.err (!%p1526_p1)
}
  0x24   :  { %65 = dma.hbm_to_vmem [thread:$0]  %s2062_s3, 512, %s1735_s30, [#allocation9], %s1674_s17, %s1674_s17, %s1675_s18  }
  0x25   :  { %s1676_s9 = smov [#allocation11]   ;;  %s1677_s11 = smov [#allocation2]  }
  0x26   :  { %s83_s10 = sshll.u32 %s1676_s9, 4  ;;  %s23_s12 = sshll.u32 %s1677_s11, 4  ;;  %s84_s10 = int_to_ptr.vmem [resolvable:$true] %s83_s10  ;;  %s1772_s12 = int_to_ptr.vmem [resolvable:$true] %s23_s12 }
  0x27   :  { %s1530_s15 = scalar_lea.hbm %s2064_s5, 512 }
  0x28   :  { %p1531_p2 = scmp.ne.s32.totalorder %s2064_s5, %s1530_s15  ;;  %p1534_p3 = scmp.lt.u32.totalorder %s1530_s15, %s2064_s5 }
  0x2a   :  { %p1536_p4 = pnand %p1534_p3, %p1531_p2 }
  0x2c   :  { %1539 = shalt.err (!%p1536_p4)
}
  0x2d   :  { %s1540_s3 = scalar_lea.vmem %s84_s10, 512  ;;  %p1545_p6 = scmp.lt.s32.totalorder %s84_s10, %s84_s10 }
  0x2e   :  { %p1541_p5 = scmp.ne.s32.totalorder %s84_s10, %s1540_s3  ;;  %p1546_p7 = scmp.lt.s32.totalorder %s1540_s3, %s1540_s3 }
  0x30   :  { %p1547_p8 = por %p1546_p7, %p1545_p6 }
  0x32   :  { %p1548_p9 = pnand %p1547_p8, %p1541_p5 }
  0x34   :  { %1551 = shalt.err (!%p1548_p9)
}
  0x35   :  { %89 = dma.hbm_to_vmem [thread:$0]  %s2064_s5, 512, %s84_s10, [#allocation12], %s1674_s17, %s1674_s17, %s1675_s18  }
  0x36   :  { %s1552_s25 = scalar_lea.hbm %s2059_s0, 256 }
  0x37   :  { %p1553_p10 = scmp.ne.s32.totalorder %s2059_s0, %s1552_s25  ;;  %p1556_p11 = scmp.lt.u32.totalorder %s1552_s25, %s2059_s0 }
  0x39   :  { %p1558_p12 = pnand %p1556_p11, %p1553_p10 }
  0x3b   :  { %1561 = shalt.err (!%p1558_p12)
}
  0x3c   :  { %s1562_s28 = scalar_lea.vmem %s1772_s12, 256  ;;  %p1567_p0 = scmp.lt.s32.totalorder %s1772_s12, %s1772_s12 }
  0x3d   :  { %p1563_p13 = scmp.ne.s32.totalorder %s1772_s12, %s1562_s28  ;;  %p1568_p1 = scmp.lt.s32.totalorder %s1562_s28, %s1562_s28 }
  0x3f   :  { %p1569_p2 = por %p1568_p1, %p1567_p0 }
  0x41   :  { %p1570_p3 = pnand %p1569_p2, %p1563_p13 }
  0x43   :  { %1573 = shalt.err (!%p1570_p3)
}
  0x44   :  { %29 = dma.hbm_to_vmem [thread:$0]  %s2059_s0, 256, %s1772_s12, [#allocation3], %s1674_s17, %s1674_s17, %s1675_s18  }
  0x45   :  { %s1678_s10 = smov [#allocation7]   ;;  %s1679_s13 = smov [#allocation10]  }
  0x46   :  { %s47_s11 = sshll.u32 %s1678_s10, 4  ;;  %s71_s14 = sshll.u32 %s1679_s13, 4  ;;  %s48_s11 = int_to_ptr.vmem [resolvable:$true] %s47_s11  ;;  %s1809_s14 = int_to_ptr.vmem [resolvable:$true] %s71_s14 }
  0x47   :  { %s1574_s19 = scalar_lea.hbm %s2061_s2, 256 }
  0x48   :  { %p1575_p4 = scmp.ne.s32.totalorder %s2061_s2, %s1574_s19  ;;  %p1578_p5 = scmp.lt.u32.totalorder %s1574_s19, %s2061_s2 }
  0x4a   :  { %p1580_p6 = pnand %p1578_p5, %p1575_p4 }
  0x4c   :  { %1583 = shalt.err (!%p1580_p6)
}
  0x4d   :  { %s1584_s0 = scalar_lea.vmem %s48_s11, 256  ;;  %p1589_p8 = scmp.lt.s32.totalorder %s48_s11, %s48_s11 }
  0x4e   :  { %p1585_p7 = scmp.ne.s32.totalorder %s48_s11, %s1584_s0  ;;  %p1590_p9 = scmp.lt.s32.totalorder %s1584_s0, %s1584_s0 }
  0x50   :  { %p1591_p10 = por %p1590_p9, %p1589_p8 }
  0x52   :  { %p1592_p11 = pnand %p1591_p10, %p1585_p7 }
  0x54   :  { %1595 = shalt.err (!%p1592_p11)
}
  0x55   :  { %53 = dma.hbm_to_vmem [thread:$0]  %s2061_s2, 256, %s48_s11, [#allocation6], %s1674_s17, %s1674_s17, %s1675_s18  }
  0x56   :  { %s1596_s25 = scalar_lea.hbm %s2063_s4, 512 }
  0x57   :  { %p1597_p12 = scmp.ne.s32.totalorder %s2063_s4, %s1596_s25  ;;  %p1600_p13 = scmp.lt.u32.totalorder %s1596_s25, %s2063_s4 }
  0x59   :  { %p1602_p0 = pnand %p1600_p13, %p1597_p12 }
  0x5b   :  { %1605 = shalt.err (!%p1602_p0)
}
  0x5c   :  { %s1606_s28 = scalar_lea.vmem %s1809_s14, 512  ;;  %p1611_p2 = scmp.lt.s32.totalorder %s1809_s14, %s1809_s14 }
  0x5d   :  { %p1607_p1 = scmp.ne.s32.totalorder %s1809_s14, %s1606_s28  ;;  %p1612_p3 = scmp.lt.s32.totalorder %s1606_s28, %s1606_s28 }
  0x5f   :  { %p1613_p4 = por %p1612_p3, %p1611_p2 }
  0x61   :  { %p1614_p5 = pnand %p1613_p4, %p1607_p1 }
  0x63   :  { %1617 = shalt.err (!%p1614_p5)
}
  0x64   :  { %77 = dma.hbm_to_vmem [thread:$0]  %s2063_s4, 512, %s1809_s14, [#allocation9], %s1674_s17, %s1674_s17, %s1675_s18  }
  0x65   :  { %s1680_s9 = smov [#allocation13]   ;;  %s1618_s15 = scalar_lea.hbm %s2066_s7, 256 }
  0x66   :  { %s97_s10 = sshll.u32 %s1680_s9, 4  ;;  %p1619_p6 = scmp.ne.s32.totalorder %s2066_s7, %s1618_s15  ;;  %s98_s10 = int_to_ptr.vmem [resolvable:$true] %s97_s10 }
  0x67   :  { %p1622_p7 = scmp.lt.u32.totalorder %s1618_s15, %s2066_s7 }
  0x69   :  { %p1624_p8 = pnand %p1622_p7, %p1619_p6 }
  0x6b   :  { %1627 = shalt.err (!%p1624_p8)
}
  0x6c   :  { %s1628_s3 = scalar_lea.vmem %s98_s10, 256  ;;  %p1633_p10 = scmp.lt.s32.totalorder %s98_s10, %s98_s10 }
  0x6d   :  { %p1629_p9 = scmp.ne.s32.totalorder %s98_s10, %s1628_s3  ;;  %p1634_p11 = scmp.lt.s32.totalorder %s1628_s3, %s1628_s3 }
  0x6f   :  { %p1635_p12 = por %p1634_p11, %p1633_p10 }
  0x71   :  { %p1636_p13 = pnand %p1635_p12, %p1629_p9 }
  0x73   :  { %1639 = shalt.err (!%p1636_p13)
}
  0x74   :  { %103 = dma.hbm_to_vmem [thread:$0]  %s2066_s7, 256, %s98_s10, [#allocation12], %s1674_s17, %s1674_s17, %s1675_s18  }
  0x75   :  { %1662 = dma.done.wait [#allocation3], 256  }
  0x76   :  { %1663 = vsyncadd [#allocation3], 4294967040 }
  0x77   :  { %1664 = dma.done.wait [#allocation6], 512  }
  0x78   :  { %1665 = vsyncadd [#allocation6], 4294966784 }
  0x79   :  { %1666 = dma.done.wait [#allocation9], 1024  }
  0x7a   :  { %1667 = vsyncadd [#allocation9], 4294966272 }
  0x7b   :  { %1668 = dma.done.wait [#allocation12], 768  }
  0x7c   :  { %1669 = vsyncadd [#allocation12], 4294966528  ;;  %v1681_v0 = vmov 0.0   ;;  %vm1682_vm0 = vmmov 0   ;;  %v135_v1 = vld [vmem:[#allocation8] sm:$0xff]  ;;  %v136_v2 = vld [vmem:[#allocation8 + $0x8] sm:$0xff] }
  0x7d   :  { %1292 = vmatprep.subr.bf16.mxu0 %v1681_v0  ;;  %1300 = vmatprep.subr.bf16.mxu1 %v1681_v0  ;;  %v141_v3 = vld [vmem:[#allocation10] sm:$0xff]  ;;  %v139_v4 = vpack.c.bf16 %v136_v2, %v135_v1  ;;  %v142_v5 = vld [vmem:[#allocation10 + $0x8] sm:$0xff]  ;;  %v137_v6 = vld [vmem:[#allocation8 + $0x10] sm:$0xff]  ;;  %s1683_s7 = smov 32   ;;  %vm157_vm1 = vcmask 261120   ;;  %s1684_s30 = smov 96  }
  0x7e   :  { %1296 = vmatprep.mubr.msk.bf16.mxu0 %vm1682_vm0, %v1681_v0  ;;  %1304 = vmatprep.mubr.msk.bf16.mxu1 %vm1682_vm0, %v1681_v0  ;;  %v138_v7 = vld [vmem:[#allocation8 + $0x18] sm:$0xff]  ;;  %v145_v8 = vpack.c.bf16 %v142_v5, %v141_v3  ;;  %v143_v9 = vld [vmem:[#allocation10 + $0x10] sm:$0xff]  ;;  %v129_v15 = vld [vmem:[#allocation5] sm:$0xff]  ;;  %vm329_vm2 = vcmask 64512   ;;  %s1685_s24 = smov 120   ;;  %s1687_s25 = smov 104  }
  0x7f   :  { %v144_v10 = vld [vmem:[#allocation10 + $0x18] sm:$0xff]  ;;  %1293 = vmatpush3.bf16.msra.mxu0 %v139_v4  ;;  %v140_v11 = vpack.c.bf16 %v138_v7, %v137_v6  ;;  %v126_v12 = vld [vmem:[#allocation2] sm:$0xff]  ;;  %v130_v16 = vld [vmem:[#allocation5 + $0x8] sm:$0xff]  ;;  %s1688_s26 = smov 64   ;;  %vm458_vm3 = vcmask 1043456   ;;  %s1689_s27 = smov [#allocation14]  }
  0x80   :  { %v127_v13 = vld [vmem:[#allocation2 + $0x8] sm:$0xff]  ;;  %1301 = vmatpush3.bf16.msra.mxu1 %v145_v8  ;;  %1294 = vmatprep.subr.bf16.mxu0 %v1681_v0  ;;  %v146_v14 = vpack.c.bf16 %v144_v10, %v143_v9  ;;  %v155_v17 = vld [vmem:[#allocation13] sm:$0xff]  ;;  %v156_v19 = vld [vmem:[#allocation13 + $0x8] sm:$0xff]  ;;  %v131_v20 = vpack.c.bf16 %v130_v16, %v129_v15  ;;  %s1217_s29 = sshll.u32 %s1689_s27, 4  ;;  %s1218_s29 = int_to_ptr.vmem [resolvable:$true] %s1217_s29 }
  0x81   :  { %1302 = vmatprep.subr.bf16.mxu1 %v1681_v0  ;;  %294 = vrot.lane.b32.xlu0 %v155_v17, %s1683_s7  ;;  %v128_v18 = vpack.c.bf16 %v127_v13, %v126_v12  ;;  %v147_v35 = vld [vmem:[#allocation11] sm:$0xff]  ;;  %v148_v36 = vld [vmem:[#allocation11 + $0x8] sm:$0xff]  ;;  %v149_v37 = vld [vmem:[#allocation11 + $0x10] sm:$0xff]  ;;  %s1640_s1 = scalar_lea.vmem %s1218_s29, 256  ;;  %p1645_p1 = scmp.lt.s32.totalorder %s1218_s29, %s1218_s29 }
  0x82   :  { %v151_v38 = vpack.c.bf16 %v148_v36, %v147_v35  ;;  %v150_v39 = vld [vmem:[#allocation11 + $0x18] sm:$0xff]  ;;  %v132_v41 = vld [vmem:[#allocation7] sm:$0xff]  ;;  %p1641_p0 = scmp.ne.s32.totalorder %s1218_s29, %s1640_s1  ;;  %p1646_p2 = scmp.lt.s32.totalorder %s1640_s1, %s1640_s1 }
  0x83   :  { %1295 = vmatpush3.bf16.msra.mxu0 %v140_v11  ;;  %v152_v40 = vpack.c.bf16 %v150_v39, %v149_v37  ;;  %v133_v42 = vld [vmem:[#allocation7 + $0x8] sm:$0xff]  ;;  %v153_v44 = vld [vmem:[%s2065_s6] sm:$0xff] }
  0x84   :  { %1303 = vmatpush3.bf16.msra.mxu1 %v146_v14  ;;  %1308 = vmatprep.subr.bf16.mxu0 %v1681_v0  ;;  %v134_v43 = vpack.c.bf16 %v133_v42, %v132_v41  ;;  %v154_v45 = vld [vmem:[%s2065_s6 + $0x8] sm:$0xff]  ;;  %s1686_s6 = smov 112   ;;  %p1647_p3 = por %p1646_p2, %p1645_p1 }
  0x85   :  { %296 = vrot.lane.b32.xlu0 %v156_v19, %s1683_s7  ;;  %1316 = vmatprep.subr.bf16.mxu1 %v1681_v0 }
  0x86   :  { %1297 = vmatmul.mubr.msk.bf16.vlgmr.msra.gmra.mrb[0].mxu0 %vm157_vm1, %v128_v18  ;;  %p1648_p4 = pnand %p1647_p3, %p1641_p0 }
  0x87   :  { %1305 = vmatmul.mubr.msk.bf16.vlgmr.msra.gmra.mrb[0].mxu1 %vm157_vm1, %v131_v20  ;;  %1312 = vmatprep.mubr.msk.bf16.mxu0 %vm1682_vm0, %v1681_v0 }
  0x88   :  { %1318 = vmatprep.mubr.msk.bf16.mxu1 %vm1682_vm0, %v1681_v0  ;;  %1309 = vmatpush3.bf16.msra.mxu0 %v151_v38 }
  0x89   :  { %1310 = vmatprep.subr.bf16.mxu0 %v1681_v0 }
  0x8c   :  { %1311 = vmatpush3.bf16.msra.mxu0 %v152_v40 }
  0x8d   :  { %1322 = vmatprep.subr.bf16.mxu0 %v1681_v0 }
  0x8f   :  { %1313 = vmatmul.mubr.msk.bf16.vlgmr.msra.gmra.mrb[4].mxu0 %vm157_vm1, %v134_v43 }
  0x90   :  { %1324 = vmatprep.mubr.msk.bf16.mxu0 %vm1682_vm0, %v1681_v0 }
  0xf3   :  { %v295_v21 = vpop.permute.xlu0 %294 }
  0xf7   :  { %v297_v23 = vpop.permute.xlu0 %296 }
 0x159   :  { %v195_v22 = vpop.f32.mrb[0].mxu0 }
 0x15a   :  { %v300_v24 = vmul.f32 %v295_v21, %v195_v22  ;;  %v239_v25 = vpop.f32.mrb[0].mxu1  ;;  %v1298_v26 = vpop.f32.mrb[1].mxu0  ;;  %v290_v53 = vmul.f32 %v195_v22, %v153_v44 }
 0x15b   :  { %v1306_v27 = vpop.f32.mrb[1].mxu1  ;;  %v315_v28 = vmul.f32 %v295_v21, %v239_v25  ;;  %v198_v29 = vpop.f32.mrb[2].mxu0  ;;  %v313_v47 = vmul.f32 %v239_v25, %v153_v44 }
 0x15c   :  { %v242_v30 = vpop.f32.mrb[2].mxu1  ;;  %304 = vrot.lane.b32.xlu0 %v300_v24, %s1684_s30  ;;  %v1299_v31 = vpop.f32.mrb[3].mxu0  ;;  %v301_v34 = vmul.f32 %v297_v23, %v198_v29  ;;  %v291_v54 = vmul.f32 %v198_v29, %v154_v45 }
 0x15d   :  { %319 = vrot.lane.b32.xlu1 %v315_v28, %s1684_s30  ;;  %v1307_v32 = vpop.f32.mrb[3].mxu1  ;;  %v316_v33 = vmul.f32 %v297_v23, %v242_v30  ;;  %v314_v48 = vmul.f32 %v242_v30, %v154_v45 }
 0x161   :  { %321 = vrot.lane.b32.xlu1 %v316_v33, %s1684_s30 }
 0x162   :  { %v1901_v2 = vpop.f32.mrb[4].mxu0 }
 0x163   :  { %v1314_v3 = vpop.f32.mrb[5].mxu0 }
 0x164   :  { %v1903_v5 = vpop.f32.mrb[6].mxu0 }
 0x165   :  { %306 = vrot.lane.b32.xlu1 %v301_v34, %s1684_s30  ;;  %v1315_v6 = vpop.f32.mrb[7].mxu0 }
 0x1ce   :  { %v305_v52 = vpop.permute.xlu0 %304 }
 0x1cf   :  { %v320_v46 = vpop.permute.xlu1 %319  ;;  %v310_v57 = vadd.f32 %v305_v52, %v290_v53 }
 0x1d0   :  { %v325_v50 = vadd.f32 %v320_v46, %v313_v47 }
 0x1d3   :  { %v322_v49 = vpop.permute.xlu1 %321 }
 0x1d4   :  { %v326_v51 = vadd.f32 %v322_v49, %v314_v48 }
 0x1d6   :  { %v327_v55 = vpack.c.bf16 %v326_v51, %v325_v50 }
 0x1d7   :  { %v307_v56 = vpop.permute.xlu1 %306 }
 0x1d8   :  { %v311_v58 = vadd.f32 %v307_v56, %v291_v54  ;;  %392 = vrot.lane.b32.xlu0 %v327_v55, %s1685_s24  ;;  %v334_v59 = vsel %vm329_vm2, %v327_v55, 0  ;;  %v772_v61 = vrot.slane %v327_v55, 4 }
 0x1d9   :  { %1317 = vmatpush3.bf16.xpose.msra.mxu1 %v334_v59 }
 0x1da   :  { %v312_v60 = vpack.c.bf16 %v311_v58, %v310_v57  ;;  %1328 = vmatprep.subr.bf16.mxu1 %v1681_v0  ;;  %v777_v13 = vsel %vm329_vm2, %v772_v61, 0 }
 0x1dc   :  { %550 = vrot.lane.b32.xlu0 %v327_v55, %s1686_s6  ;;  %389 = vrot.lane.b32.xlu1 %v312_v60, %s1685_s24  ;;  %v771_v62 = vrot.slane %v312_v60, 4 }
 0x1e0   :  { %661 = vrot.lane.b32.xlu0 %v327_v55, %s1687_s25  ;;  %548 = vrot.lane.b32.xlu1 %v312_v60, %s1686_s6 }
 0x1e1   :  { %1319 = vmatmul.mubr.msk.bf16.vlgmr.msra.gmra.mrb[4].mxu1 %vm329_vm2, %v312_v60 }
 0x1e2   :  { %1330 = vmatprep.mubr.msk.bf16.mxu1 %vm1682_vm0, %v1681_v0 }
 0x1e4   :  { %833 = vrot.lane.b32.xlu0 %v772_v61, %s1685_s24  ;;  %659 = vrot.lane.b32.xlu1 %v312_v60, %s1687_s25 }
 0x1e8   :  { %990 = vrot.lane.b32.xlu0 %v772_v61, %s1686_s6  ;;  %831 = vrot.lane.b32.xlu1 %v771_v62, %s1685_s24 }
 0x1ec   :  { %1101 = vrot.lane.b32.xlu0 %v772_v61, %s1687_s25  ;;  %988 = vrot.lane.b32.xlu1 %v771_v62, %s1686_s6 }
 0x1f0   :  { %1099 = vrot.lane.b32.xlu1 %v771_v62, %s1687_s25 }
 0x24a   :  { %v393_v63 = vpop.permute.xlu0 %392 }
 0x24b   :  { %v398_v1 = vsel %vm329_vm2, %v393_v63, 0 }
 0x24c   :  { %1323 = vmatpush3.bf16.xpose.msra.mxu0 %v398_v1 }
 0x24d   :  { %1340 = vmatprep.subr.bf16.mxu0 %v1681_v0 }
 0x24e   :  { %v551_v4 = vpop.permute.xlu0 %550  ;;  %v390_v7 = vpop.permute.xlu1 %389 }
 0x24f   :  { %v556_v8 = vsel %vm329_vm2, %v551_v4, 0 }
 0x252   :  { %v662_v9 = vpop.permute.xlu0 %661  ;;  %v549_v10 = vpop.permute.xlu1 %548 }
 0x253   :  { %1325 = vmatmul.mubr.msk.bf16.vlgmr.msra.gmra.mrb[8].mxu0 %vm329_vm2, %v390_v7  ;;  %v667_v11 = vsel %vm329_vm2, %v662_v9, 0  ;;  %v1952_v7 = vpack.c.bf16 %v1901_v2, %v1901_v2 }
 0x254   :  { %1341 = vmatpush3.bf16.xpose.msra.mxu0 %v556_v8  ;;  %1342 = vmatprep.mubr.msk.bf16.mxu0 %vm1682_vm0, %v1681_v0 }
 0x255   :  { %1352 = vmatprep.subr.bf16.mxu0 %v1681_v0 }
 0x256   :  { %v660_v12 = vpop.permute.xlu1 %659  ;;  %v834_v14 = vpop.permute.xlu0 %833 }
 0x257   :  { %v839_v15 = vsel %vm329_vm2, %v834_v14, 0 }
 0x25a   :  { %v991_v16 = vpop.permute.xlu0 %990  ;;  %v832_v17 = vpop.permute.xlu1 %831 }
 0x25b   :  { %1343 = vmatmul.mubr.msk.bf16.vlgmr.msra.gmra.mrb[12].mxu0 %vm329_vm2, %v549_v10  ;;  %v996_v18 = vsel %vm329_vm2, %v991_v16, 0 }
 0x25c   :  { %1353 = vmatpush3.bf16.xpose.msra.mxu0 %v667_v11  ;;  %1354 = vmatprep.mubr.msk.bf16.mxu0 %vm1682_vm0, %v1681_v0 }
 0x25d   :  { %1364 = vmatprep.subr.bf16.mxu0 %v1681_v0 }
 0x25e   :  { %v1102_v19 = vpop.permute.xlu0 %1101  ;;  %v989_v20 = vpop.permute.xlu1 %988 }
 0x25f   :  { %v1107_v21 = vsel %vm329_vm2, %v1102_v19, 0 }
 0x262   :  { %v1100_v22 = vpop.permute.xlu1 %1099 }
 0x263   :  { %1355 = vmatmul.mubr.msk.bf16.vlgmr.msra.gmra.mrb[16].mxu0 %vm329_vm2, %v660_v12 }
 0x264   :  { %1365 = vmatpush3.bf16.xpose.msra.mxu0 %v777_v13  ;;  %1366 = vmatprep.mubr.msk.bf16.mxu0 %vm1682_vm0, %v1681_v0 }
 0x265   :  { %1370 = vmatprep.subr.bf16.mxu0 %v1681_v0 }
 0x26b   :  { %1367 = vmatmul.mubr.msk.bf16.vlgmr.msra.gmra.mrb[20].mxu0 %vm329_vm2, %v771_v62 }
 0x26c   :  { %1371 = vmatpush3.bf16.xpose.msra.mxu0 %v839_v15  ;;  %1372 = vmatprep.mubr.msk.bf16.mxu0 %vm1682_vm0, %v1681_v0 }
 0x26d   :  { %1388 = vmatprep.subr.bf16.mxu0 %v1681_v0 }
 0x273   :  { %1373 = vmatmul.mubr.msk.bf16.vlgmr.msra.gmra.mrb[24].mxu0 %vm329_vm2, %v832_v17 }
 0x274   :  { %1389 = vmatpush3.bf16.xpose.msra.mxu0 %v996_v18  ;;  %1390 = vmatprep.mubr.msk.bf16.mxu0 %vm1682_vm0, %v1681_v0 }
 0x275   :  { %1400 = vmatprep.subr.bf16.mxu0 %v1681_v0 }
 0x27b   :  { %1391 = vmatmul.mubr.msk.bf16.vlgmr.msra.gmra.mrb[28].mxu0 %vm329_vm2, %v989_v20 }
 0x27c   :  { %1401 = vmatpush3.bf16.xpose.msra.mxu0 %v1107_v21  ;;  %1402 = vmatprep.mubr.msk.bf16.mxu0 %vm1682_vm0, %v1681_v0 }
 0x283   :  { %1403 = vmatmul.mubr.msk.bf16.vlgmr.msra.gmra.mrb[32].mxu0 %vm329_vm2, %v1100_v22 }
 0x2b4   :  { %v370_v23 = vpop.f32.mrb[4].mxu1 }
 0x2b5   :  { %v1320_v24 = vpop.f32.mrb[5].mxu1  ;;  %v376_v25 = vsel %vm329_vm2, %v370_v23, -inf }
 0x2b6   :  { %377 = vmax.xlane.f32.xlu1 %v376_v25  ;;  %v373_v26 = vpop.f32.mrb[6].mxu1 }
 0x2b7   :  { %v1321_v27 = vpop.f32.mrb[7].mxu1 }
 0x326   :  { %v434_v28 = vpop.f32.mrb[8].mxu0 }
 0x327   :  { %v1326_v29 = vpop.f32.mrb[9].mxu0  ;;  %v440_v30 = vsel %vm329_vm2, %v434_v28, -inf }
 0x328   :  { %441 = vmax.xlane.f32.xlu0 %v440_v30  ;;  %v437_v31 = vpop.f32.mrb[10].mxu0 }
 0x329   :  { %v1327_v32 = vpop.f32.mrb[11].mxu0 }
 0x32e   :  { %v592_v33 = vpop.f32.mrb[12].mxu0 }
 0x32f   :  { %v1344_v34 = vpop.f32.mrb[13].mxu0  ;;  %v598_v35 = vsel %vm329_vm2, %v592_v33, -inf }
 0x330   :  { %599 = vmax.xlane.f32.xlu0 %v598_v35  ;;  %v595_v36 = vpop.f32.mrb[14].mxu0 }
 0x331   :  { %v1345_v37 = vpop.f32.mrb[15].mxu0  ;;  %v1979_v36 = vpack.c.bf16 %v1903_v5, %v1903_v5 }
 0x336   :  { %v703_v38 = vpop.f32.mrb[16].mxu0 }
 0x337   :  { %v1356_v39 = vpop.f32.mrb[17].mxu0  ;;  %v709_v40 = vsel %vm329_vm2, %v703_v38, -inf }
 0x338   :  { %710 = vmax.xlane.f32.xlu0 %v709_v40  ;;  %v706_v41 = vpop.f32.mrb[18].mxu0 }
 0x339   :  { %v1357_v42 = vpop.f32.mrb[19].mxu0 }
 0x33e   :  { %v813_v43 = vpop.f32.mrb[20].mxu0 }
 0x33f   :  { %v1368_v44 = vpop.f32.mrb[21].mxu0  ;;  %v819_v45 = vsel %vm329_vm2, %v813_v43, -inf }
 0x340   :  { %820 = vmax.xlane.f32.xlu0 %v819_v45  ;;  %v816_v46 = vpop.f32.mrb[22].mxu0 }
 0x341   :  { %v1369_v47 = vpop.f32.mrb[23].mxu0 }
 0x343   :  { %v378_v48 = vpop.xlane.xlu1 %377 }
 0x344   :  { %v379_v49 = vsub.f32 %v370_v23, %v378_v48 }
 0x346   :  { %v380_v50 = vmul.f32 1.442695, %v379_v49  ;;  %v875_v51 = vpop.f32.mrb[24].mxu0 }
 0x347   :  { %v1374_v52 = vpop.f32.mrb[25].mxu0  ;;  %v881_v53 = vsel %vm329_vm2, %v875_v51, -inf }
 0x348   :  { %1454 = vpow2.f32 %v380_v50  ;;  %882 = vmax.xlane.f32.xlu1 %v881_v53  ;;  %v878_v54 = vpop.f32.mrb[26].mxu0  ;;  %v506_v50 = vsel %vm458_vm3, %v1952_v7, 0 }
 0x349   :  { %v1375_v55 = vpop.f32.mrb[27].mxu0 }
 0x34e   :  { %v1941_v56 = vpop.f32.mrb[28].mxu0 }
 0x34f   :  { %v1392_v57 = vpop.f32.mrb[29].mxu0  ;;  %v1038_v58 = vsel %vm329_vm2, %v1941_v56, -inf }
 0x350   :  { %1039 = vmax.xlane.f32.xlu1 %v1038_v58  ;;  %v1035_v59 = vpop.f32.mrb[30].mxu0 }
 0x351   :  { %v1393_v60 = vpop.f32.mrb[31].mxu0 }
 0x352   :  { %v1945_v61 = vpop.eup %1454 }
 0x353   :  { %v382_v62 = vsel %vm329_vm2, %v1945_v61, 0.0 }
 0x354   :  { %383 = vadd.xlane.f32.xlu0 %v382_v62 }
 0x356   :  { %v1143_v63 = vpop.f32.mrb[32].mxu0 }
 0x357   :  { %v1404_v1 = vpop.f32.mrb[33].mxu0  ;;  %v1149_v3 = vsel %vm329_vm2, %v1143_v63, -inf }
 0x358   :  { %1150 = vmax.xlane.f32.xlu0 %v1149_v3  ;;  %v1146_v4 = vpop.f32.mrb[34].mxu0 }
 0x359   :  { %v1405_v6 = vpop.f32.mrb[35].mxu0 }
 0x361   :  { %610 = vrot.lane.b32.xlu1 %v1952_v7, %s1688_s26 }
 0x36e   :  { %453 = vrot.lane.b32.xlu0 %v1952_v7, %s1684_s30 }
 0x3b5   :  { %v442_v8 = vpop.xlane.xlu0 %441 }
 0x3b6   :  { %v443_v9 = vsub.f32 %v434_v28, %v442_v8 }
 0x3b8   :  { %v444_v10 = vmul.f32 1.442695, %v443_v9 }
 0x3ba   :  { %1456 = vpow2.f32 %v444_v10 }
 0x3bd   :  { %v600_v11 = vpop.xlane.xlu0 %599 }
 0x3be   :  { %v601_v12 = vsub.f32 %v592_v33, %v600_v11  ;;  %v946_v11 = vsel %vm458_vm3, %v1979_v36, 0 }
 0x3c0   :  { %v602_v13 = vmul.f32 1.442695, %v601_v12 }
 0x3c2   :  { %1458 = vpow2.f32 %v602_v13 }
 0x3c4   :  { %v1457_v14 = vpop.eup %1456 }
 0x3c5   :  { %v711_v15 = vpop.xlane.xlu0 %710  ;;  %v446_v2 = vsel %vm329_vm2, %v1457_v14, 0.0 }
 0x3c6   :  { %v712_v16 = vsub.f32 %v703_v38, %v711_v15  ;;  %447 = vadd.xlane.f32.xlu1 %v446_v2 }
 0x3c8   :  { %v713_v17 = vmul.f32 1.442695, %v712_v16 }
 0x3ca   :  { %1460 = vpow2.f32 %v713_v17 }
 0x3cc   :  { %v1959_v18 = vpop.eup %1458 }
 0x3cd   :  { %v821_v19 = vpop.xlane.xlu0 %820  ;;  %v604_v20 = vsel %vm329_vm2, %v1959_v18, 0.0 }
 0x3ce   :  { %v822_v21 = vsub.f32 %v813_v43, %v821_v19  ;;  %605 = vadd.xlane.f32.xlu1 %v604_v20 }
 0x3d0   :  { %v823_v22 = vmul.f32 1.442695, %v822_v21 }
 0x3d2   :  { %1462 = vpow2.f32 %v823_v22 }
 0x3d4   :  { %v1963_v23 = vpop.eup %1460 }
 0x3d5   :  { %v883_v24 = vpop.xlane.xlu1 %882  ;;  %v715_v25 = vsel %vm329_vm2, %v1963_v23, 0.0 }
 0x3d6   :  { %v884_v26 = vsub.f32 %v875_v51, %v883_v24  ;;  %716 = vadd.xlane.f32.xlu1 %v715_v25 }
 0x3d8   :  { %v885_v27 = vmul.f32 1.442695, %v884_v26 }
 0x3da   :  { %1464 = vpow2.f32 %v885_v27 }
 0x3dc   :  { %v1967_v28 = vpop.eup %1462 }
 0x3dd   :  { %v825_v29 = vsel %vm329_vm2, %v1967_v28, 0.0  ;;  %v1040_v37 = vpop.xlane.xlu1 %1039 }
 0x3de   :  { %826 = vadd.xlane.f32.xlu0 %v825_v29  ;;  %v1041_v38 = vsub.f32 %v1941_v56, %v1040_v37 }
 0x3e0   :  { %v1042_v39 = vmul.f32 1.442695, %v1041_v38 }
 0x3e1   :  { %v384_v30 = vpop.xlane.xlu0 %383  ;;  %v611_v45 = vpop.permute.xlu1 %610 }
 0x3e2   :  { %1466 = vpow2.f32 %v1042_v39  ;;  %v616_v55 = vsel %vm458_vm3, %v611_v45, 0 }
 0x3e4   :  { %v1971_v31 = vpop.eup %1464 }
 0x3e5   :  { %v1151_v32 = vpop.xlane.xlu0 %1150  ;;  %v887_v33 = vsel %vm329_vm2, %v1971_v31, 0.0 }
 0x3e6   :  { %888 = vadd.xlane.f32.xlu1 %v887_v33  ;;  %v1152_v40 = vsub.f32 %v1143_v63, %v1151_v32 }
 0x3e8   :  { %v1153_v41 = vmul.f32 1.442695, %v1152_v40 }
 0x3e9   :  { %v454_v34 = vpop.permute.xlu0 %453 }
 0x3ea   :  { %v460_v35 = vsel %vm458_vm3, %v454_v34, 0  ;;  %1468 = vpow2.f32 %v1153_v41 }
 0x3eb   :  { %1329 = vmatpush3.bf16.msra.mxu1 %v460_v35 }
 0x3ec   :  { %1334 = vmatprep.subr.bf16.mxu1 %v1681_v0  ;;  %v1988_v42 = vpop.eup %1466 }
 0x3ed   :  { %v1044_v5 = vsel %vm329_vm2, %v1988_v42, 0.0 }
 0x3f4   :  { %894 = vrot.lane.b32.xlu0 %v1979_v36, %s1684_s30  ;;  %v1992_v43 = vpop.eup %1468 }
 0x3f5   :  { %v1155_v44 = vsel %vm329_vm2, %v1992_v43, 0.0 }
 0x3f7   :  { %721 = vrot.lane.b32.xlu1 %v1952_v7, %s1683_s7 }
 0x3f8   :  { %1161 = vrot.lane.b32.xlu0 %v1979_v36, %s1683_s7 }
 0x41b   :  { %1045 = vadd.xlane.f32.xlu1 %v1044_v5 }
 0x41f   :  { %1156 = vadd.xlane.f32.xlu1 %v1155_v44 }
 0x430   :  { %1050 = vrot.lane.b32.xlu1 %v1979_v36, %s1688_s26 }
 0x453   :  { %v448_v46 = vpop.xlane.xlu1 %447 }
 0x454   :  { %1470 = vrcp.f32 %v448_v46 }
 0x455   :  { %1472 = vrcp.f32 %v384_v30 }
 0x45b   :  { %v606_v51 = vpop.xlane.xlu1 %605 }
 0x45c   :  { %1474 = vrcp.f32 %v606_v51 }
 0x45e   :  { %v1471_v47 = vpop.eup %1470 }
 0x45f   :  { %v450_v48 = vmul.f32 %v1471_v47, %v1457_v14  ;;  %v1473_v52 = vpop.eup %1472 }
 0x460   :  { %v386_v53 = vmul.f32 %v1473_v52, %v1945_v61 }
 0x461   :  { %v451_v49 = vpack.c.bf16 %v450_v48, %v450_v48 }
 0x462   :  { %v387_v54 = vpack.c.bf16 %v386_v53, %v386_v53 }
 0x463   :  { %1331 = vmatmul.mubr.msk.bf16.vlgmr.msra.gmra.mrb[8].mxu1 %vm329_vm2, %v451_v49  ;;  %v717_v56 = vpop.xlane.xlu1 %716 }
 0x464   :  { %1335 = vmatpush3.bf16.msra.mxu1 %v506_v50  ;;  %1336 = vmatprep.mubr.msk.bf16.mxu1 %vm1682_vm0, %v1681_v0  ;;  %1476 = vrcp.f32 %v717_v56 }
 0x465   :  { %1346 = vmatprep.subr.bf16.mxu1 %v1681_v0 }
 0x466   :  { %v1475_v57 = vpop.eup %1474 }
 0x467   :  { %v608_v59 = vmul.f32 %v1475_v57, %v1959_v18 }
 0x469   :  { %v609_v62 = vpack.c.bf16 %v608_v59, %v608_v59 }
 0x46b   :  { %v827_v1 = vpop.xlane.xlu0 %826 }
 0x46e   :  { %v1477_v63 = vpop.eup %1476 }
 0x46f   :  { %1337 = vmatmul.mubr.msk.bf16.vlgmr.msra.gmra.mrb[8].mxu1 %vm329_vm2, %v387_v54  ;;  %v719_v3 = vmul.f32 %v1477_v63, %v1963_v23  ;;  %v895_v4 = vpop.permute.xlu0 %894 }
 0x470   :  { %1347 = vmatpush3.bf16.msra.mxu1 %v616_v55  ;;  %1348 = vmatprep.mubr.msk.bf16.mxu1 %vm1682_vm0, %v1681_v0  ;;  %v900_v8 = vsel %vm458_vm3, %v895_v4, 0 }
 0x471   :  { %1358 = vmatprep.subr.bf16.mxu1 %v1681_v0  ;;  %v720_v6 = vpack.c.bf16 %v719_v3, %v719_v3 }
 0x473   :  { %v889_v58 = vpop.xlane.xlu1 %888  ;;  %v1162_v20 = vpop.permute.xlu0 %1161 }
 0x474   :  { %1478 = vrcp.f32 %v889_v58  ;;  %v1167_v22 = vsel %vm458_vm3, %v1162_v20, 0 }
 0x475   :  { %1480 = vrcp.f32 %v827_v1 }
 0x477   :  { %v722_v60 = vpop.permute.xlu1 %721 }
 0x478   :  { %v727_v61 = vsel %vm458_vm3, %v722_v60, 0 }
 0x47b   :  { %1349 = vmatmul.mubr.msk.bf16.vlgmr.msra.gmra.mrb[8].mxu1 %vm329_vm2, %v609_v62 }
 0x47c   :  { %1359 = vmatpush3.bf16.msra.mxu1 %v727_v61  ;;  %1360 = vmatprep.mubr.msk.bf16.mxu1 %vm1682_vm0, %v1681_v0 }
 0x47d   :  { %1376 = vmatprep.subr.bf16.mxu1 %v1681_v0 }
 0x47e   :  { %v1479_v7 = vpop.eup %1478 }
 0x47f   :  { %v891_v9 = vmul.f32 %v1479_v7, %v1971_v31  ;;  %v1481_v12 = vpop.eup %1480 }
 0x480   :  { %v829_v13 = vmul.f32 %v1481_v12, %v1967_v28 }
 0x481   :  { %v892_v10 = vpack.c.bf16 %v891_v9, %v891_v9 }
 0x482   :  { %v830_v14 = vpack.c.bf16 %v829_v13, %v829_v13 }
 0x487   :  { %1361 = vmatmul.mubr.msk.bf16.vlgmr.msra.gmra.mrb[8].mxu1 %vm329_vm2, %v720_v6 }
 0x488   :  { %1377 = vmatpush3.bf16.msra.mxu1 %v900_v8  ;;  %1378 = vmatprep.mubr.msk.bf16.mxu1 %vm1682_vm0, %v1681_v0 }
 0x489   :  { %1382 = vmatprep.subr.bf16.mxu1 %v1681_v0 }
 0x48f   :  { %1379 = vmatmul.mubr.msk.bf16.vlgmr.msra.gmra.mrb[12].mxu1 %vm329_vm2, %v892_v10 }
 0x490   :  { %1383 = vmatpush3.bf16.msra.mxu1 %v946_v11  ;;  %1384 = vmatprep.mubr.msk.bf16.mxu1 %vm1682_vm0, %v1681_v0 }
 0x491   :  { %1394 = vmatprep.subr.bf16.mxu1 %v1681_v0 }
 0x49b   :  { %1385 = vmatmul.mubr.msk.bf16.vlgmr.msra.gmra.mrb[12].mxu1 %vm329_vm2, %v830_v14 }
 0x49c   :  { %1396 = vmatprep.mubr.msk.bf16.mxu1 %vm1682_vm0, %v1681_v0 }
 0x4a8   :  { %v1046_v15 = vpop.xlane.xlu1 %1045 }
 0x4a9   :  { %1482 = vrcp.f32 %v1046_v15 }
 0x4ac   :  { %v1157_v2 = vpop.xlane.xlu1 %1156 }
 0x4ad   :  { %1484 = vrcp.f32 %v1157_v2 }
 0x4b0   :  { %v1051_v16 = vpop.permute.xlu1 %1050 }
 0x4b1   :  { %v1056_v17 = vsel %vm458_vm3, %v1051_v16, 0 }
 0x4b2   :  { %1395 = vmatpush3.bf16.msra.mxu1 %v1056_v17 }
 0x4b3   :  { %v1483_v18 = vpop.eup %1482  ;;  %1406 = vmatprep.subr.bf16.mxu1 %v1681_v0 }
 0x4b4   :  { %v1048_v19 = vmul.f32 %v1483_v18, %v1988_v42 }
 0x4b6   :  { %v1049_v21 = vpack.c.bf16 %v1048_v19, %v1048_v19 }
 0x4b7   :  { %v1485_v23 = vpop.eup %1484 }
 0x4b8   :  { %1397 = vmatmul.mubr.msk.bf16.vlgmr.msra.gmra.mrb[12].mxu1 %vm329_vm2, %v1049_v21  ;;  %v1159_v24 = vmul.f32 %v1485_v23, %v1992_v43 }
 0x4b9   :  { %1407 = vmatpush3.bf16.msra.mxu1 %v1167_v22  ;;  %1408 = vmatprep.mubr.msk.bf16.mxu1 %vm1682_vm0, %v1681_v0 }
 0x4ba   :  { %v1160_v25 = vpack.c.bf16 %v1159_v24, %v1159_v24 }
 0x4c4   :  { %1409 = vmatmul.mubr.msk.bf16.vlgmr.msra.gmra.mrb[12].mxu1 %vm329_vm2, %v1160_v25 }
 0x55a   :  { %v763_v26 = vpop.f32.mrb[8].mxu1 }
 0x55b   :  { %1210 = vst.msk [vmem:[#allocation14] sm:$0xff] %vm157_vm1, %v763_v26  ;;  %v1362_v27 = vpop.f32.mrb[9].mxu1 }
 0x55c   :  { %v766_v28 = vpop.f32.mrb[10].mxu1 }
 0x55d   :  { %v1363_v29 = vpop.f32.mrb[11].mxu1 }
 0x597   :  { %v1203_v30 = vpop.f32.mrb[12].mxu1 }
 0x598   :  { %1211 = vst.msk [vmem:[#allocation14 + $0x8] sm:$0xff] %vm157_vm1, %v1203_v30  ;;  %v1410_v31 = vpop.f32.mrb[13].mxu1 }
 0x599   :  { %v1206_v0 = vpop.f32.mrb[14].mxu1 }
 0x59a   :  { %1651 = shalt.err (!%p1648_p4)
}
 0x59b   :  { %s1652_s5 = scalar_lea.hbm %s2067_s8, 256 }
 0x59c   :  { %p1653_p5 = scmp.ne.s32.totalorder %s2067_s8, %s1652_s5  ;;  %p1656_p6 = scmp.lt.u32.totalorder %s1652_s5, %s2067_s8 }
 0x59e   :  { %p1658_p7 = pnand %p1656_p6, %p1653_p5 }
 0x5a0   :  { %1661 = shalt.err (!%p1658_p7)
}
 0x5a1   :  { %1223 = dma.vmem_to_hbm [thread:$0]  %s1218_s29, 256, %s2067_s8, [#allocation4], %s1674_s17, %s1674_s17, %s1675_s18   ;;  %v1411_v32 = vpop.f32.mrb[15].mxu1 }
 0x5a2   :  { %1670 = dma.done.wait [#allocation4], 256  }
 0x5a3   :  { %1671 = vsyncadd [#allocation4], 4294967040 }
 0x5a4   :  { %1227 = vsyncpa [#allocation3], 1 }
 0x5a5   :  { %1228 = vsyncpa [#allocation6], 1 }
 0x5a6   :  { %1229 = vsyncpa [#allocation9], 1 }
 0x5a7   :  { %1230 = vsyncpa [#allocation12], 1 }
 0x5a8   :  { %1231 = vsyncpa [#allocation4], 1 }

</bundles_post_ra>
